<compile_context>
chip_gen: v5e
topology: v5e:2x2
jax: 0.10.0
libtpu: 0.0.40
codegen_flags: <defaults>
</compile_context>

<pallas_src>
import jax
import jax.numpy as jnp
from jax.experimental import pallas as pl
from jax.experimental.pallas import tpu as pltpu


def _make_kernel(n_pairs, hinge_scale, info_gan, ce_scale):
    """Build the loss kernel for a static loss_mode configuration.

    n_pairs:     number of (real, fake) score-head pairs passed in.
    hinge_scale: (4 if info_gan else 1) / (B * K * divisor), folded into one mul.
    info_gan:    whether the InfoGAN cross-entropy tensors are present.
    ce_scale:    1 / B for the cross-entropy batch mean (only used if info_gan).
    """

    def kernel(*refs):
        real_refs = refs[:n_pairs]
        fake_refs = refs[n_pairs:2 * n_pairs]
        rest = refs[2 * n_pairs:]
        if info_gan:
            c_r_ref, p_r_ref, c_f_ref, p_f_ref = rest[0], rest[1], rest[2], rest[3]
            out_ref = rest[4]
        else:
            out_ref = rest[0]

        # Hinge terms for all active heads, fused into one VPU expression and a
        # single reduction.  Cast to f32 is the first op on every loaded tile.
        terms = jnp.maximum(1.0 - real_refs[0][...].astype(jnp.float32), 0.0)
        for r in real_refs[1:]:
            terms = terms + jnp.maximum(1.0 - r[...].astype(jnp.float32), 0.0)
        for f in fake_refs:
            terms = terms + jnp.maximum(1.0 + f[...].astype(jnp.float32), 0.0)
        loss = jnp.sum(terms) * hinge_scale

        if info_gan:
            # Closed form of the PyTorch `correct_disc += correct_disc + I` loop:
            #   final = 4*hinge + 2*ce_real + 1*ce_fake
            # (the 4x is already folded into hinge_scale).  Per-half weights 2
            # and 1 are applied inside one fused elementwise pass + one sum.
            c_r = c_r_ref[...].astype(jnp.float32)
            p_r = p_r_ref[...].astype(jnp.float32)
            c_f = c_f_ref[...].astype(jnp.float32)
            p_f = p_f_ref[...].astype(jnp.float32)
            ce = jnp.sum(-(2.0 * c_r * jnp.log(p_r + 1e-8)
                           + c_f * jnp.log(p_f + 1e-8)))
            loss = loss + ce * ce_scale

        out_ref[...] = jnp.reshape(loss, (1, 1))

    return kernel


_MODE_CONFIG = {
    "all":      (("comb", "z", "img"), 3.0),
    "info_gan": (("comb", "z", "img"), 3.0),
    "no_sx":    (("comb", "z"), 2.0),
    "no_sz":    (("comb", "img"), 2.0),
    "no_sxz":   (("z", "img"), 1.0),
}
_REAL_KEY = {"comb": "comb_real_score", "z": "z_img_score", "img": "img_real_score"}
_FAKE_KEY = {"comb": "comb_gen_score", "z": "z_noise_score", "img": "img_gen_score"}


def bidiscriminator_loss(output, c_real, c_fake, loss_mode):
    if loss_mode not in _MODE_CONFIG:
        raise ValueError(f"unknown loss_mode {loss_mode}")
    pairs, divisor = _MODE_CONFIG[loss_mode]
    info_gan = loss_mode == "info_gan"
    n_pairs = len(pairs)

    real_args = [output[_REAL_KEY[p]] for p in pairs]
    fake_args = [output[_FAKE_KEY[p]] for p in pairs]

    # Robustness: every selected head must share the same [B, K] so the
    # 1/(B*K*divisor) normalization is valid.
    b_sc, k_sc = real_args[0].shape
    for t in real_args + fake_args:
        assert t.shape == (b_sc, k_sc), (
            f"score head shape mismatch: {t.shape} vs {(b_sc, k_sc)}")

    hinge_scale = (4.0 if info_gan else 1.0) / (float(b_sc) * float(k_sc) * divisor)

    args = list(real_args) + list(fake_args)
    ce_scale = 1.0
    transcendentals = 0
    if info_gan:
        c_args = [c_real, output["c_real_predict"], c_fake, output["c_gen_predict"]]
        assert c_real.shape == output["c_real_predict"].shape
        assert c_fake.shape == output["c_gen_predict"].shape
        ce_scale = 1.0 / float(c_real.shape[0])
        args += c_args
        transcendentals = 2 * c_real.shape[0] * c_real.shape[1]

    kernel = _make_kernel(n_pairs, hinge_scale, info_gan, ce_scale)

    bytes_accessed = sum(int(a.size) * a.dtype.itemsize for a in args) + 4
    cost = pl.CostEstimate(
        flops=4 * b_sc * k_sc * n_pairs + 6 * transcendentals,
        transcendentals=transcendentals,
        bytes_accessed=bytes_accessed,
    )

    out = pl.pallas_call(
        kernel,
        out_shape=jax.ShapeDtypeStruct((1, 1), jnp.float32),
        in_specs=[pl.BlockSpec(memory_space=pltpu.MemorySpace.VMEM)] * len(args),
        out_specs=pl.BlockSpec(memory_space=pltpu.MemorySpace.VMEM),
        cost_estimate=cost,
    )(*args)
    return out[0, 0]


def _reference_loss(output, c_real, c_fake, loss_mode):
    """Pure-JAX reference mirroring the PyTorch forward exactly."""
    relu = lambda x: jnp.maximum(x, 0.0)
    comb_f = output["comb_gen_score"]
    comb_r = output["comb_real_score"]
    z_f = output["z_noise_score"]
    z_r = output["z_img_score"]
    img_f = output["img_gen_score"]
    img_r = output["img_real_score"]
    if loss_mode in ("all", "info_gan"):
        real = jnp.mean(relu(1.0 - comb_r) + relu(1.0 - z_r) + relu(1.0 - img_r))
        fake = jnp.mean(relu(1.0 + comb_f) + relu(1.0 + z_f) + relu(1.0 + img_f))
        cd = (real + fake) / 3
    elif loss_mode == "no_sx":
        real = jnp.mean(relu(1.0 - comb_r) + relu(1.0 - z_r))
        fake = jnp.mean(relu(1.0 + comb_f) + relu(1.0 + z_f))
        cd = (real + fake) / 2
    elif loss_mode == "no_sz":
        real = jnp.mean(relu(1.0 - comb_r) + relu(1.0 - img_r))
        fake = jnp.mean(relu(1.0 + comb_f) + relu(1.0 + img_f))
        cd = (real + fake) / 2
    elif loss_mode == "no_sxz":
        real = jnp.mean(relu(1.0 - z_r) + relu(1.0 - img_r))
        fake = jnp.mean(relu(1.0 + z_f) + relu(1.0 + img_f))
        cd = real + fake
    if loss_mode == "info_gan":
        for c, p in ((c_real, output["c_real_predict"]),
                     (c_fake, output["c_gen_predict"])):
            ce = jnp.mean(-jnp.sum(c * jnp.log(p + 1e-8), axis=1))
            cd = cd + cd + 1.0 * ce
    return cd


if __name__ == "__main__":
    B, C = 8, 8
    key = jax.random.PRNGKey(0)
    keys = jax.random.split(key, 12)

    output = {
        "comb_real_score": jax.random.normal(keys[0], (B, 1), jnp.float32),
        "comb_gen_score": jax.random.normal(keys[1], (B, 1), jnp.float32),
        "z_img_score": jax.random.normal(keys[2], (B, 1), jnp.float32),
        "z_noise_score": jax.random.normal(keys[3], (B, 1), jnp.float32),
        "img_real_score": jax.random.normal(keys[4], (B, 1), jnp.float32),
        "img_gen_score": jax.random.normal(keys[5], (B, 1), jnp.float32),
        "c_real_predict": jax.nn.softmax(
            jax.random.normal(keys[6], (B, C), jnp.float32), axis=-1),
        "c_gen_predict": jax.nn.softmax(
            jax.random.normal(keys[7], (B, C), jnp.float32), axis=-1),
    }
    c_real = jax.nn.one_hot(
        jax.random.randint(keys[8], (B,), 0, C), C, dtype=jnp.float32)
    c_fake = jax.nn.one_hot(
        jax.random.randint(keys[9], (B,), 0, C), C, dtype=jnp.float32)

    for mode in ("all", "no_sx", "no_sz", "no_sxz", "info_gan"):
        got = jax.block_until_ready(
            bidiscriminator_loss(output, c_real, c_fake, mode))
        want = _reference_loss(output, c_real, c_fake, mode)
        if not jnp.allclose(got, want, rtol=1e-5, atol=1e-5):
            raise AssertionError(f"mismatch in mode {mode}: {got} vs {want}")

    print("KERNEL_OK")
</pallas_src>

<mosaic_0001>
module attributes {stable_mosaic.version = 11 : i64} {
  func.func @kernel(%arg0: memref<8x1xf32, #tpu.memory_space<vmem>>, %arg1: memref<8x1xf32, #tpu.memory_space<vmem>>, %arg2: memref<8x1xf32, #tpu.memory_space<vmem>>, %arg3: memref<8x1xf32, #tpu.memory_space<vmem>>, %arg4: memref<8x1xf32, #tpu.memory_space<vmem>>, %arg5: memref<8x1xf32, #tpu.memory_space<vmem>>, %arg6: memref<1x1xf32, #tpu.memory_space<vmem>>) attributes {dimension_semantics = [], scalar_prefetch = 0 : i64, scratch_operands = 0 : i64, tpu.core_type = #tpu.core_type<tc>} {
    %c0 = arith.constant 0 : index
    %c0_0 = arith.constant 0 : index
    %0 = vector.load %arg0[%c0, %c0_0] : memref<8x1xf32, #tpu.memory_space<vmem>>, vector<8x1xf32>
    %cst = arith.constant 1.000000e+00 : f32
    %1 = vector.broadcast %cst : f32 to vector<8x1xf32>
    %2 = arith.subf %1, %0 : vector<8x1xf32>
    %cst_1 = arith.constant 0.000000e+00 : f32
    %3 = vector.broadcast %cst_1 : f32 to vector<8x1xf32>
    %4 = arith.maximumf %2, %3 : vector<8x1xf32>
    %c0_2 = arith.constant 0 : index
    %c0_3 = arith.constant 0 : index
    %5 = vector.load %arg1[%c0_2, %c0_3] : memref<8x1xf32, #tpu.memory_space<vmem>>, vector<8x1xf32>
    %cst_4 = arith.constant 1.000000e+00 : f32
    %6 = vector.broadcast %cst_4 : f32 to vector<8x1xf32>
    %7 = arith.subf %6, %5 : vector<8x1xf32>
    %cst_5 = arith.constant 0.000000e+00 : f32
    %8 = vector.broadcast %cst_5 : f32 to vector<8x1xf32>
    %9 = arith.maximumf %7, %8 : vector<8x1xf32>
    %10 = arith.addf %4, %9 : vector<8x1xf32>
    %c0_6 = arith.constant 0 : index
    %c0_7 = arith.constant 0 : index
    %11 = vector.load %arg2[%c0_6, %c0_7] : memref<8x1xf32, #tpu.memory_space<vmem>>, vector<8x1xf32>
    %cst_8 = arith.constant 1.000000e+00 : f32
    %12 = vector.broadcast %cst_8 : f32 to vector<8x1xf32>
    %13 = arith.subf %12, %11 : vector<8x1xf32>
    %cst_9 = arith.constant 0.000000e+00 : f32
    %14 = vector.broadcast %cst_9 : f32 to vector<8x1xf32>
    %15 = arith.maximumf %13, %14 : vector<8x1xf32>
    %16 = arith.addf %10, %15 : vector<8x1xf32>
    %c0_10 = arith.constant 0 : index
    %c0_11 = arith.constant 0 : index
    %17 = vector.load %arg3[%c0_10, %c0_11] : memref<8x1xf32, #tpu.memory_space<vmem>>, vector<8x1xf32>
    %cst_12 = arith.constant 1.000000e+00 : f32
    %18 = vector.broadcast %cst_12 : f32 to vector<8x1xf32>
    %19 = arith.addf %18, %17 : vector<8x1xf32>
    %cst_13 = arith.constant 0.000000e+00 : f32
    %20 = vector.broadcast %cst_13 : f32 to vector<8x1xf32>
    %21 = arith.maximumf %19, %20 : vector<8x1xf32>
    %22 = arith.addf %16, %21 : vector<8x1xf32>
    %c0_14 = arith.constant 0 : index
    %c0_15 = arith.constant 0 : index
    %23 = vector.load %arg4[%c0_14, %c0_15] : memref<8x1xf32, #tpu.memory_space<vmem>>, vector<8x1xf32>
    %cst_16 = arith.constant 1.000000e+00 : f32
    %24 = vector.broadcast %cst_16 : f32 to vector<8x1xf32>
    %25 = arith.addf %24, %23 : vector<8x1xf32>
    %cst_17 = arith.constant 0.000000e+00 : f32
    %26 = vector.broadcast %cst_17 : f32 to vector<8x1xf32>
    %27 = arith.maximumf %25, %26 : vector<8x1xf32>
    %28 = arith.addf %22, %27 : vector<8x1xf32>
    %c0_18 = arith.constant 0 : index
    %c0_19 = arith.constant 0 : index
    %29 = vector.load %arg5[%c0_18, %c0_19] : memref<8x1xf32, #tpu.memory_space<vmem>>, vector<8x1xf32>
    %cst_20 = arith.constant 1.000000e+00 : f32
    %30 = vector.broadcast %cst_20 : f32 to vector<8x1xf32>
    %31 = arith.addf %30, %29 : vector<8x1xf32>
    %cst_21 = arith.constant 0.000000e+00 : f32
    %32 = vector.broadcast %cst_21 : f32 to vector<8x1xf32>
    %33 = arith.maximumf %31, %32 : vector<8x1xf32>
    %34 = arith.addf %28, %33 : vector<8x1xf32>
    %35 = vector.shape_cast %34 : vector<8x1xf32> to vector<1x8x1xf32>
    %cst_22 = arith.constant dense<0.000000e+00> : vector<1xf32>
    %36 = vector.multi_reduction <add>, %35, %cst_22 [1, 2] : vector<1x8x1xf32> to vector<1xf32>
    %37 = vector.shape_cast %36 : vector<1xf32> to vector<1x1x1xf32>
    %38 = vector.extract %37[0, 0, 0] : f32 from vector<1x1x1xf32>
    %cst_23 = arith.constant 0.0416666679 : f32
    %39 = arith.mulf %38, %cst_23 : f32
    %40 = vector.broadcast %39 : f32 to vector<1x1xf32>
    %c0_24 = arith.constant 0 : index
    %c0_25 = arith.constant 0 : index
    %41 = vector.load %arg6[%c0_24, %c0_25] : memref<1x1xf32, #tpu.memory_space<vmem>>, vector<1x1xf32>
    tpu.vector_store %arg6[%c0_24, %c0_25], %40 {strides = array<i32>} : memref<1x1xf32, #tpu.memory_space<vmem>>, vector<1x1xf32>,
    return
  }
}

</mosaic_0001>

<bundles_post_ra>
// kernel: tpu_custom_call.1
= control target key start
LH: loop header
LB: loop body
LE: loop exit
PB: predicated region body
PF: predicated region fallthrough
CT: control target
= control target key end

     0   :  { %s164_s0 = inlined_call_operand.vmem [shape: f32[8,1], index: 0, kind: input, shape index: {}]   ;;  %s165_s1 = inlined_call_operand.vmem [shape: f32[8,1], index: 1, kind: input, shape index: {}]   ;;  %s166_s2 = inlined_call_operand.vmem [shape: f32[8,1], index: 2, kind: input, shape index: {}]   ;;  %s167_s3 = inlined_call_operand.vmem [shape: f32[8,1], index: 3, kind: input, shape index: {}]   ;;  %s168_s4 = inlined_call_operand.vmem [shape: f32[8,1], index: 4, kind: input, shape index: {}]   ;;  %s169_s5 = inlined_call_operand.vmem [shape: f32[8,1], index: 5, kind: input, shape index: {}]   ;;  %s170_s6 = inlined_call_operand.hbm [shape: f32[1,1], index: 6, kind: output, shape index: {}]  }
   0x1   :  { %v24_v0 = vld [vmem:[%s164_s0] sm:$0xff] }
   0x2   :  { %v27_v1 = vld [vmem:[%s165_s1] sm:$0xff]  ;;  %v25_v3 = vsub.f32 1.0, %v24_v0 }
   0x3   :  { %v31_v2 = vld [vmem:[%s166_s2] sm:$0xff]  ;;  %v28_v4 = vsub.f32 1.0, %v27_v1 }
   0x4   :  { %v32_v5 = vsub.f32 1.0, %v31_v2  ;;  %v35_v6 = vld [vmem:[%s167_s3] sm:$0xff] }
   0x5   :  { %v39_v7 = vld [vmem:[%s168_s4] sm:$0xff]  ;;  %v36_v8 = vadd.f32 1.0, %v35_v6 }
   0x6   :  { %v43_v9 = vld [vmem:[%s169_s5] sm:$0xff] }
   0x7   :  { %11 = vsyncpa [#allocation3], 0  ;;  %v26_v10 = vmax.f32 %v25_v3, 0.0  ;;  %v29_v11 = vmax.f32 %v28_v4, 0.0  ;;  %v33_v12 = vmax.f32 %v32_v5, 0.0  ;;  %v40_v13 = vadd.f32 1.0, %v39_v7 }
   0x8   :  { %v37_v15 = vmax.f32 %v36_v8, 0.0  ;;  %v44_v16 = vadd.f32 1.0, %v43_v9  ;;  %vm47_vm0 = vcmask 7168   ;;  %s107_s1 = smov [#allocation2]   ;;  %s69_s5 = sshll.u32 %s170_s6, 4  ;;  %vm60_vm1 = vcmask 0   ;;  %s70_s5 = int_to_ptr.hbm [resolvable:$true] %s69_s5 }
   0x9   :  { %v30_v14 = vadd.f32 %v29_v11, %v26_v10  ;;  %v41_v18 = vmax.f32 %v40_v13, 0.0  ;;  %s67_s2 = sshll.u32 %s107_s1, 4  ;;  %s68_s2 = int_to_ptr.vmem [resolvable:$true] %s67_s2 }
   0xa   :  { %v45_v20 = vmax.f32 %v44_v16, 0.0 }
   0xb   :  { %v34_v17 = vadd.f32 %v33_v12, %v30_v14 }
   0xd   :  { %v38_v19 = vadd.f32 %v37_v15, %v34_v17 }
   0xf   :  { %v42_v21 = vadd.f32 %v41_v18, %v38_v19 }
  0x11   :  { %v46_v22 = vadd.f32 %v45_v20, %v42_v21 }
  0x13   :  { %v48_v23 = vsel %vm47_vm0, %v46_v22, 0.0 }
  0x14   :  { %49 = vadd.xlane.f32.xlu0 %v48_v23 }
  0x87   :  { %v50_v24 = vpop.xlane.xlu0 %49 }
  0x88   :  { %v51_v25 = vrot.slane %v50_v24, 4 }
  0x8a   :  { %v52_v26 = vadd.f32 %v51_v25, %v50_v24 }
  0x8c   :  { %v53_v27 = vrot.slane %v52_v26, 2 }
  0x8e   :  { %v54_v28 = vadd.f32 %v53_v27, %v52_v26 }
  0x90   :  { %v55_v29 = vrot.slane %v54_v28, 1 }
  0x92   :  { %v56_v30 = vadd.f32 %v55_v29, %v54_v28 }
  0x94   :  { %78 = vpush %v56_v30 }
  0xc5   :  { %s79_s8 = spop %78 }
  0xc6   :  { %s58_s9 = smul.f32 0.041666668, %s79_s8 }
  0xc8   :  { %v59_v31 = vstv %s58_s9 }
  0xc9   :  { %61 = vst.msk [vmem:[#allocation2] sm:$0x1] %vm60_vm1, %v59_v31 }
  0xca   :  { %72 = dma.vmem_to_hbm [thread:$0]  %s68_s2, 16, %s70_s5, [#allocation3]  }
  0xcb   :  { %105 = dma.done.wait [#allocation3], 16  }
  0xcc   :  { %106 = vsyncadd [#allocation3], 4294967280 }
  0xcd   :  { %77 = vsyncpa [#allocation3], 1 }

</bundles_post_ra>
